<compile_context>
chip_gen: v6e
topology: v6e:2x2x1
jax: 0.10.0
libtpu: 0.0.40
codegen_flags: <defaults>
</compile_context>

<pallas_src>
import jax
import jax.numpy as jnp
from jax.experimental import pallas as pl
from jax.experimental.pallas import tpu as pltpu

ENC_PAD = 128   # lane-dense padded encoder output width
CLS_PAD = 16    # padded class width (output slab width; 16*4B = 64 B/row)


def classifier_kernel(x_ref, we_ref, be_ref, wf_ref, bf_ref, o_ref):
    # Encoder: Linear(hidden -> 128 padded) + ReLU.  Padded lanes are exactly 0.
    h = jnp.dot(x_ref[...], we_ref[...], preferred_element_type=jnp.float32)
    h = jnp.maximum(h + be_ref[...], 0.0)                  # (tb, 128)

    # fc: Linear(128 padded -> 16 padded classes); padded class bias = -1e30
    # so exp() underflows to exactly 0 and they never contribute to softmax.
    logits = jnp.dot(h, wf_ref[...], preferred_element_type=jnp.float32)
    logits = logits + bf_ref[...]                          # (tb, 16)

    # Numerically stable softmax over the class axis (exact divide; the approx
    # EUP reciprocal's ~1e-3 error is too coarse for probability outputs).
    m = jnp.max(logits, axis=1, keepdims=True)
    e = jnp.exp(logits - m)
    denom = jnp.sum(e, axis=1, keepdims=True)
    o_ref[...] = (e / denom).astype(o_ref.dtype)


def classifier_forward(x, w_enc, b_enc, w_fc, b_fc, *, tb=2048):
    """x: (B, hidden); w_enc: (hidden, 16); b_enc: (1, 16);
    w_fc: (16, num_classes); b_fc: (1, num_classes). Returns (B, num_classes)."""
    B, hidden = x.shape
    enc_out = w_enc.shape[1]
    num_classes = w_fc.shape[1]
    assert enc_out <= ENC_PAD and num_classes <= CLS_PAD

    # Zero-pad encoder width to 128 lanes (exact: ReLU(x@0 + 0) = 0).
    w_enc_p = jnp.zeros((hidden, ENC_PAD), jnp.float32).at[:, :enc_out].set(w_enc)
    b_enc_p = jnp.zeros((1, ENC_PAD), jnp.float32).at[:, :enc_out].set(b_enc)
    # Pad classes to 16: zero weight rows/cols, padded bias -1e30 -> prob 0.
    w_fc_p = jnp.zeros((ENC_PAD, CLS_PAD), jnp.float32).at[:enc_out, :num_classes].set(w_fc)
    b_fc_p = jnp.full((1, CLS_PAD), -1e30, jnp.float32).at[:, :num_classes].set(b_fc)

    # Batch tile: as large as possible (amortize per-step overhead), but capped
    # so the grid has >= 2 steps when B allows -> both v7x TensorCores are used.
    tb = min(tb, B)
    if B >= 16:
        half = ((pl.cdiv(B, 2) + 7) // 8) * 8
        tb = min(tb, half)
    if tb < B:
        tb = ((tb + 7) // 8) * 8       # block dim must be a multiple of 8
    grid = (pl.cdiv(B, tb),)

    out_padded = pl.pallas_call(
        classifier_kernel,
        out_shape=jax.ShapeDtypeStruct((B, CLS_PAD), jnp.float32),
        grid=grid,
        in_specs=[
            pl.BlockSpec((tb, hidden), lambda i: (i, 0)),         # x: streamed per tile
            # Constant (0,0) block index -> Pallas DMAs these once and keeps
            # them VMEM-resident across grid steps.
            pl.BlockSpec((hidden, ENC_PAD), lambda i: (0, 0)),
            pl.BlockSpec((1, ENC_PAD), lambda i: (0, 0)),
            pl.BlockSpec((ENC_PAD, CLS_PAD), lambda i: (0, 0)),
            pl.BlockSpec((1, CLS_PAD), lambda i: (0, 0)),
        ],
        out_specs=pl.BlockSpec((tb, CLS_PAD), lambda i: (i, 0)),
        compiler_params=pltpu.CompilerParams(
            dimension_semantics=("parallel",),
            vmem_limit_bytes=32 << 20,   # tb=8192 f32 tiles double-buffered ~ a few MiB
        ),
    )(x, w_enc_p, b_enc_p, w_fc_p, b_fc_p)

    if num_classes == CLS_PAD:
        return out_padded
    return out_padded[:, :num_classes]


if __name__ == "__main__":
    B, HIDDEN, ENC_OUT, NUM_CLASSES = 256, 32, 16, 10

    key = jax.random.PRNGKey(0)
    k_x, k_we, k_be, k_wf, k_bf = jax.random.split(key, 5)

    x = jax.random.normal(k_x, (B, HIDDEN), dtype=jnp.float32)

    # Deterministic synthetic parameters (stored as (in, out)).
    w_enc = jax.random.normal(k_we, (HIDDEN, ENC_OUT), dtype=jnp.float32) * 0.1
    b_enc = jax.random.normal(k_be, (1, ENC_OUT), dtype=jnp.float32) * 0.1
    w_fc = jax.random.normal(k_wf, (ENC_OUT, NUM_CLASSES), dtype=jnp.float32) * 0.1
    b_fc = jax.random.normal(k_bf, (1, NUM_CLASSES), dtype=jnp.float32) * 0.1

    out = classifier_forward(x, w_enc, b_enc, w_fc, b_fc)
    out = jax.block_until_ready(out)

    # Reference check in plain JAX (same math path).
    h_ref = jnp.maximum(x @ w_enc + b_enc, 0.0)
    logits_ref = h_ref @ w_fc + b_fc
    probs_ref = jax.nn.softmax(logits_ref, axis=1)

    assert out.shape == (B, NUM_CLASSES)
    assert jnp.allclose(out, probs_ref, atol=1e-5, rtol=1e-4)
    assert jnp.allclose(jnp.sum(out, axis=1), 1.0, atol=1e-4)

    print("KERNEL_OK")
</pallas_src>

<mosaic_0001>
module attributes {stable_mosaic.version = 11 : i64} {
  func.func @classifier_kernel(%arg0: i32, %arg1: memref<128x32xf32, #tpu.memory_space<vmem>>, %arg2: memref<32x128xf32, #tpu.memory_space<vmem>>, %arg3: memref<1x128xf32, #tpu.memory_space<vmem>>, %arg4: memref<128x16xf32, #tpu.memory_space<vmem>>, %arg5: memref<1x16xf32, #tpu.memory_space<vmem>>, %arg6: memref<128x16xf32, #tpu.memory_space<vmem>>) attributes {dimension_semantics = [#tpu.dimension_semantics<parallel>], iteration_bounds = array<i64: 2>, scalar_prefetch = 0 : i64, scratch_operands = 0 : i64, tpu.core_type = #tpu.core_type<tc>, window_params = [{transform_indices = @transform_0, window_bounds = array<i64: 128, 32>}, {pipeline_mode = #tpu.pipeline_mode<synchronous>, transform_indices = @transform_1, window_bounds = array<i64: 32, 128>}, {pipeline_mode = #tpu.pipeline_mode<synchronous>, transform_indices = @transform_2, window_bounds = array<i64: 1, 128>}, {pipeline_mode = #tpu.pipeline_mode<synchronous>, transform_indices = @transform_3, window_bounds = array<i64: 128, 16>}, {pipeline_mode = #tpu.pipeline_mode<synchronous>, transform_indices = @transform_4, window_bounds = array<i64: 1, 16>}, {transform_indices = @transform_5, window_bounds = array<i64: 128, 16>}]} {
    %c0 = arith.constant 0 : index
    %c0_0 = arith.constant 0 : index
    %0 = vector.load %arg1[%c0, %c0_0] : memref<128x32xf32, #tpu.memory_space<vmem>>, vector<128x32xf32>
    %c0_1 = arith.constant 0 : index
    %c0_2 = arith.constant 0 : index
    %1 = vector.load %arg2[%c0_1, %c0_2] : memref<32x128xf32, #tpu.memory_space<vmem>>, vector<32x128xf32>
    %cst = arith.constant dense<0.000000e+00> : vector<128x128xf32>
    %2 = tpu.matmul %0, %1, %cst {dimension_numbers = #tpu.dot_dimension_numbers<[1], [0], [0], [1], [0, 0, 1, 1], [], []>} : vector<128x32xf32>, vector<32x128xf32>, vector<128x128xf32> -> vector<128x128xf32>
    %c0_3 = arith.constant 0 : index
    %c0_4 = arith.constant 0 : index
    %3 = vector.load %arg3[%c0_3, %c0_4] : memref<1x128xf32, #tpu.memory_space<vmem>>, vector<1x128xf32>
    %4 = vector.broadcast %3 : vector<1x128xf32> to vector<128x128xf32>
    %5 = arith.addf %2, %4 : vector<128x128xf32>
    %cst_5 = arith.constant 0.000000e+00 : f32
    %6 = vector.broadcast %cst_5 : f32 to vector<128x128xf32>
    %7 = arith.maximumf %5, %6 : vector<128x128xf32>
    %c0_6 = arith.constant 0 : index
    %c0_7 = arith.constant 0 : index
    %8 = vector.load %arg4[%c0_6, %c0_7] : memref<128x16xf32, #tpu.memory_space<vmem>>, vector<128x16xf32>
    %cst_8 = arith.constant dense<0.000000e+00> : vector<128x16xf32>
    %9 = tpu.matmul %7, %8, %cst_8 {dimension_numbers = #tpu.dot_dimension_numbers<[1], [0], [0], [1], [0, 0, 1, 1], [], []>} : vector<128x128xf32>, vector<128x16xf32>, vector<128x16xf32> -> vector<128x16xf32>
    %c0_9 = arith.constant 0 : index
    %c0_10 = arith.constant 0 : index
    %10 = vector.load %arg5[%c0_9, %c0_10] : memref<1x16xf32, #tpu.memory_space<vmem>>, vector<1x16xf32>
    %11 = vector.broadcast %10 : vector<1x16xf32> to vector<128x16xf32>
    %12 = arith.addf %9, %11 : vector<128x16xf32>
    %cst_11 = arith.constant dense<0xFF800000> : vector<128xf32>
    %13 = vector.multi_reduction <maximumf>, %12, %cst_11 [1] : vector<128x16xf32> to vector<128xf32>
    %14 = vector.shape_cast %13 : vector<128xf32> to vector<128x1xf32>
    %15 = vector.broadcast %14 : vector<128x1xf32> to vector<128x16xf32>
    %16 = arith.subf %12, %15 : vector<128x16xf32>
    %17 = math.exp %16 : vector<128x16xf32>
    %cst_12 = arith.constant dense<0.000000e+00> : vector<128xf32>
    %18 = vector.multi_reduction <add>, %17, %cst_12 [1] : vector<128x16xf32> to vector<128xf32>
    %19 = vector.shape_cast %18 : vector<128xf32> to vector<128x1xf32>
    %20 = vector.broadcast %19 : vector<128x1xf32> to vector<128x16xf32>
    %21 = arith.divf %17, %20 : vector<128x16xf32>
    %c0_13 = arith.constant 0 : index
    %c0_14 = arith.constant 0 : index
    %22 = vector.load %arg6[%c0_13, %c0_14] : memref<128x16xf32, #tpu.memory_space<vmem>>, vector<128x16xf32>
    tpu.vector_store %arg6[%c0_13, %c0_14], %21 {strides = array<i32>} : memref<128x16xf32, #tpu.memory_space<vmem>>, vector<128x16xf32>,
    return
  }
  func.func @transform_0(%arg0: i32) -> (i32, i32) {
    %c0_i32 = arith.constant 0 : i32
    %c0_i32_0 = arith.constant 0 : i32
    return %arg0, %c0_i32 : i32, i32
  }
  func.func @transform_1(%arg0: i32) -> (i32, i32) {
    %c0_i32 = arith.constant 0 : i32
    %c0_i32_0 = arith.constant 0 : i32
    %c0_i32_1 = arith.constant 0 : i32
    return %c0_i32, %c0_i32_0 : i32, i32
  }
  func.func @transform_2(%arg0: i32) -> (i32, i32) {
    %c0_i32 = arith.constant 0 : i32
    %c0_i32_0 = arith.constant 0 : i32
    %c0_i32_1 = arith.constant 0 : i32
    return %c0_i32, %c0_i32_0 : i32, i32
  }
  func.func @transform_3(%arg0: i32) -> (i32, i32) {
    %c0_i32 = arith.constant 0 : i32
    %c0_i32_0 = arith.constant 0 : i32
    %c0_i32_1 = arith.constant 0 : i32
    return %c0_i32, %c0_i32_0 : i32, i32
  }
  func.func @transform_4(%arg0: i32) -> (i32, i32) {
    %c0_i32 = arith.constant 0 : i32
    %c0_i32_0 = arith.constant 0 : i32
    %c0_i32_1 = arith.constant 0 : i32
    return %c0_i32, %c0_i32_0 : i32, i32
  }
  func.func @transform_5(%arg0: i32) -> (i32, i32) {
    %c0_i32 = arith.constant 0 : i32
    %c0_i32_0 = arith.constant 0 : i32
    return %arg0, %c0_i32 : i32, i32
  }
}

</mosaic_0001>

<bundles_post_ra>
// kernel: tpu_custom_call.1
= control target key start
LH: loop header
LB: loop body
LE: loop exit
PB: predicated region body
PF: predicated region fallthrough
CT: control target
= control target key end

     0   :  { %s1193_s18 = smov 0   ;;  %s1511_s0 = inlined_call_operand.vmem [shape: f32[256,32], index: 0, kind: input, shape index: {}]   ;;  %s1512_s1 = inlined_call_operand.vmem [shape: f32[32,128], index: 1, kind: input, shape index: {}]   ;;  %s1513_s2 = inlined_call_operand.vmem [shape: f32[1,128], index: 2, kind: input, shape index: {}]   ;;  %s1514_s3 = inlined_call_operand.vmem [shape: f32[128,16], index: 3, kind: input, shape index: {}]   ;;  %s1515_s4 = inlined_call_operand.vmem [shape: f32[1,16], index: 4, kind: input, shape index: {}]   ;;  %s1516_s5 = inlined_call_operand.vmem [shape: f32[256,16], index: 5, kind: output, shape index: {}]  }
   0x1 LB: > { %s882_s19 = sadd.s32 4294967295, %s1161_s18   ;;  %p886_p0 = scmp.ge.s32.totalorder %s1161_s18, 1  ;;  %s1161_s18 = sphi %s1193_s18, %s15_s18  }
   0x2   : > { %p188_p1 = scmp.lt.s32.totalorder %s1161_s18, 3 }
   0x4   : > { %p189_p2 = pnand %p886_p0, %p188_p1 }
   0x5   : > { %s887_s24 = sshll.u32 (!%p189_p2), %s882_s19, 4 }
   0x6   : > { %192 = sbr.rel (%p189_p2) target bundleno = 761 (0x2f9), region = 40  ;;  %p217_p3 = scmp.lt.s32.totalorder (!%p189_p2), %s887_s24, 31 }
   0xb   : > { %v247_v0 = vld [vmem:[%s1512_s1 + $0x18] sm:$0xff]  ;;  %v246_v1 = vld [vmem:[%s1512_s1 + $0x10] sm:$0xff]  ;;  %v245_v3 = vld [vmem:[%s1512_s1 + $0x8] sm:$0xff]  ;;  %s1518_s24 = smov (!%p217_p3, %s887_s24), 31  ;;  %vm255_vm0 = vcmask 261120   ;;  %vm633_vm1 = vcmask 130048  }
   0xc   : > { %963 = vmatprep.subr.mxu0 %v247_v0  ;;  %v480_v2 = vld [vmem:[%s1514_s3 + $0x78] sm:$0xff]  ;;  %v479_v4 = vld [vmem:[%s1514_s3 + $0x70] sm:$0xff]  ;;  %v244_v5 = vld [vmem:[%s1512_s1] sm:$0xff]  ;;  %s888_s8 = sshll.u32 %s1518_s24, 3 }
   0xd   : > { %964 = vmatpush3.msra.mxu0 %v247_v0  ;;  %1051 = vmatprep.subr.mxu1 %v480_v2  ;;  %v478_v6 = vld [vmem:[%s1514_s3 + $0x68] sm:$0xff]  ;;  %s1230_s13 = scalar_lea.vmem %s1511_s0, %s888_s8  ;;  %v477_v11 = vld [vmem:[%s1514_s3 + $0x60] sm:$0xff]  ;;  %v476_v14 = vld [vmem:[%s1514_s3 + $0x58] sm:$0xff]  ;;  %s1458_s26 = scalar_lea.vmem %s1516_s5, %s888_s8 }
   0xe   : > { %965 = vmatprep.subr.mxu0 %v246_v1  ;;  %1067 = vmatpush3.msra.mxu1 %v480_v2  ;;  %v228_v7 = vld [vmem:[%s1230_s13] sm:$0xff]  ;;  %v229_v8 = vld [vmem:[%s1230_s13 + $0x8] sm:$0xff]  ;;  %v230_v9 = vld [vmem:[%s1230_s13 + $0x10] sm:$0xff] }
   0xf   : > { %966 = vmatpush3.msra.mxu0 %v246_v1  ;;  %1052 = vmatprep.subr.mxu1 %v479_v4  ;;  %v231_v10 = vld [vmem:[%s1230_s13 + $0x18] sm:$0xff]  ;;  %v232_v12 = vld [vmem:[%s1230_s13 + $0x20] sm:$0xff]  ;;  %v233_v13 = vld [vmem:[%s1230_s13 + $0x28] sm:$0xff] }
  0x10   : > { %967 = vmatprep.subr.mxu0 %v245_v3  ;;  %1068 = vmatpush3.msra.mxu1 %v479_v4  ;;  %v234_v15 = vld [vmem:[%s1230_s13 + $0x30] sm:$0xff]  ;;  %v235_v17 = vld [vmem:[%s1230_s13 + $0x38] sm:$0xff]  ;;  %v474_v18 = vld [vmem:[%s1514_s3 + $0x48] sm:$0xff] }
  0x11   : > { %968 = vmatpush3.msra.mxu0 %v245_v3  ;;  %1053 = vmatprep.subr.mxu1 %v478_v6  ;;  %v475_v16 = vld [vmem:[%s1514_s3 + $0x50] sm:$0xff]  ;;  %v236_v19 = vld [vmem:[%s1230_s13 + $0x40] sm:$0xff]  ;;  %v237_v21 = vld [vmem:[%s1230_s13 + $0x48] sm:$0xff] }
  0x12   : > { %969 = vmatprep.subr.mxu0 %v244_v5  ;;  %1069 = vmatpush3.msra.mxu1 %v478_v6  ;;  %v473_v20 = vld [vmem:[%s1514_s3 + $0x40] sm:$0xff]  ;;  %v472_v22 = vld [vmem:[%s1514_s3 + $0x38] sm:$0xff]  ;;  %v238_v23 = vld [vmem:[%s1230_s13 + $0x50] sm:$0xff] }
  0x13   : > { %970 = vmatpush3.msra.mxu0 %v244_v5  ;;  %971 = vmatprep.mubr.msk.f32.mxu0 %vm255_vm0, %v228_v7  ;;  %v471_v24 = vld [vmem:[%s1514_s3 + $0x30] sm:$0xff]  ;;  %v239_v25 = vld [vmem:[%s1230_s13 + $0x58] sm:$0xff]  ;;  %v470_v26 = vld [vmem:[%s1514_s3 + $0x28] sm:$0xff] }
  0x14   : > { %972 = vmatmul.mubr.msk.f32.vlgmr.msra.gmra.mxu0 %vm255_vm0, %v229_v8  ;;  %995 = vmatprep.subr.mxu0 %v480_v2  ;;  %v240_v27 = vld [vmem:[%s1230_s13 + $0x60] sm:$0xff]  ;;  %v241_v29 = vld [vmem:[%s1230_s13 + $0x68] sm:$0xff]  ;;  %v468_v30 = vld [vmem:[%s1514_s3 + $0x18] sm:$0xff] }
  0x15   : > { %974 = vmatprep.mubr.msk.f32.mxu0 %vm255_vm0, %v230_v9  ;;  %996 = vmatpush3.msra.mxu0 %v480_v2  ;;  %v469_v28 = vld [vmem:[%s1514_s3 + $0x20] sm:$0xff]  ;;  %v242_v31 = vld [vmem:[%s1230_s13 + $0x70] sm:$0xff]  ;;  %v243_v32 = vld [vmem:[%s1230_s13 + $0x78] sm:$0xff] }
  0x16   : > { %997 = vmatprep.subr.mxu0 %v479_v4  ;;  %1054 = vmatprep.subr.mxu1 %v477_v11  ;;  %v467_v33 = vld [vmem:[%s1514_s3 + $0x10] sm:$0xff]  ;;  %v466_v34 = vld [vmem:[%s1514_s3 + $0x8] sm:$0xff]  ;;  %v465_v35 = vld [vmem:[%s1514_s3] sm:$0xff] }
  0x17   : > { %998 = vmatpush3.msra.mxu0 %v479_v4  ;;  %1070 = vmatpush3.msra.mxu1 %v477_v11  ;;  %v891_v36 = vld [vmem:[%s1513_s2] ss:$0 sm:$0xff] }
  0x18   : > { %975 = vmatmul.mubr.msk.f32.gmra.mxu0 %vm255_vm0, %v231_v10  ;;  %999 = vmatprep.subr.mxu0 %v478_v6 }
  0x19   : > { %977 = vmatprep.mubr.msk.f32.mxu0 %vm255_vm0, %v232_v12  ;;  %1000 = vmatpush3.msra.mxu0 %v478_v6 }
  0x1a   : > { %1001 = vmatprep.subr.mxu0 %v477_v11  ;;  %1055 = vmatprep.subr.mxu1 %v476_v14 }
  0x1b   : > { %1002 = vmatpush3.msra.mxu0 %v477_v11  ;;  %1071 = vmatpush3.msra.mxu1 %v476_v14 }
  0x1c   : > { %978 = vmatmul.mubr.msk.f32.gmra.mxu0 %vm255_vm0, %v233_v13  ;;  %1003 = vmatprep.subr.mxu0 %v476_v14 }
  0x1d   : > { %980 = vmatprep.mubr.msk.f32.mxu0 %vm255_vm0, %v234_v15  ;;  %1004 = vmatpush3.msra.mxu0 %v476_v14 }
  0x1e   : > { %1005 = vmatprep.subr.mxu0 %v475_v16  ;;  %1056 = vmatprep.subr.mxu1 %v475_v16 }
  0x1f   : > { %1006 = vmatpush3.msra.mxu0 %v475_v16  ;;  %1072 = vmatpush3.msra.mxu1 %v475_v16 }
  0x20   : > { %981 = vmatmul.mubr.msk.f32.gmra.mxu0 %vm255_vm0, %v235_v17  ;;  %1007 = vmatprep.subr.mxu0 %v474_v18 }
  0x21   : > { %983 = vmatprep.mubr.msk.f32.mxu0 %vm255_vm0, %v236_v19  ;;  %1008 = vmatpush3.msra.mxu0 %v474_v18 }
  0x22   : > { %1009 = vmatprep.subr.mxu0 %v473_v20  ;;  %1057 = vmatprep.subr.mxu1 %v474_v18 }
  0x23   : > { %1010 = vmatpush3.msra.mxu0 %v473_v20  ;;  %1073 = vmatpush3.msra.mxu1 %v474_v18 }
  0x24   : > { %984 = vmatmul.mubr.msk.f32.gmra.mxu0 %vm255_vm0, %v237_v21  ;;  %1011 = vmatprep.subr.mxu0 %v472_v22  ;;  %v908_v21 = vld [vmem:[%s1515_s4] ss:$0 sm:$0xff] }
  0x25   : > { %986 = vmatprep.mubr.msk.f32.mxu0 %vm255_vm0, %v238_v23  ;;  %1012 = vmatpush3.msra.mxu0 %v472_v22 }
  0x26   : > { %1013 = vmatprep.subr.mxu0 %v471_v24  ;;  %1058 = vmatprep.subr.mxu1 %v473_v20 }
  0x27   : > { %1014 = vmatpush3.msra.mxu0 %v471_v24  ;;  %1074 = vmatpush3.msra.mxu1 %v473_v20 }
  0x28   : > { %987 = vmatmul.mubr.msk.f32.gmra.mxu0 %vm255_vm0, %v239_v25  ;;  %1015 = vmatprep.subr.mxu0 %v470_v26 }
  0x29   : > { %989 = vmatprep.mubr.msk.f32.mxu0 %vm255_vm0, %v240_v27  ;;  %1016 = vmatpush3.msra.mxu0 %v470_v26 }
  0x2a   : > { %1017 = vmatprep.subr.mxu0 %v469_v28  ;;  %1059 = vmatprep.subr.mxu1 %v472_v22 }
  0x2b   : > { %1018 = vmatpush3.msra.mxu0 %v469_v28  ;;  %1075 = vmatpush3.msra.mxu1 %v472_v22 }
  0x2c   : > { %990 = vmatmul.mubr.msk.f32.gmra.mxu0 %vm255_vm0, %v241_v29  ;;  %1019 = vmatprep.subr.mxu0 %v468_v30 }
  0x2d   : > { %992 = vmatprep.mubr.msk.f32.mxu0 %vm255_vm0, %v242_v31  ;;  %1020 = vmatpush3.msra.mxu0 %v468_v30 }
  0x2e   : > { %1060 = vmatprep.subr.mxu1 %v471_v24  ;;  %1021 = vmatprep.subr.mxu0 %v467_v33 }
  0x2f   : > { %1076 = vmatpush3.msra.mxu1 %v471_v24  ;;  %1022 = vmatpush3.msra.mxu0 %v467_v33 }
  0x30   : > { %993 = vmatmul.mubr.msk.f32.gmra.mxu0 %vm255_vm0, %v243_v32  ;;  %1061 = vmatprep.subr.mxu1 %v470_v26 }
  0x31   : > { %1077 = vmatpush3.msra.mxu1 %v470_v26  ;;  %1023 = vmatprep.subr.mxu0 %v466_v34 }
  0x32   : > { %1062 = vmatprep.subr.mxu1 %v469_v28  ;;  %1024 = vmatpush3.msra.mxu0 %v466_v34 }
  0x33   : > { %1078 = vmatpush3.msra.mxu1 %v469_v28  ;;  %1025 = vmatprep.subr.mxu0 %v465_v35 }
  0x34   : > { %1063 = vmatprep.subr.mxu1 %v468_v30  ;;  %1026 = vmatpush3.msra.mxu0 %v465_v35 }
  0x35   : > { %1079 = vmatpush3.msra.mxu1 %v468_v30 }
  0x36   : > { %1064 = vmatprep.subr.mxu1 %v467_v33 }
  0x37   : > { %1080 = vmatpush3.msra.mxu1 %v467_v33 }
  0x38   : > { %1065 = vmatprep.subr.mxu1 %v466_v34 }
  0x39   : > { %1081 = vmatpush3.msra.mxu1 %v466_v34 }
  0x3a   : > { %1066 = vmatprep.subr.mxu1 %v465_v35 }
  0x3b   : > { %1082 = vmatpush3.msra.mxu1 %v465_v35 }
  0xd4   : > { %v973_v37 = vpop.f32.mrf.mxu0 }
  0xd5   : > { %v376_v38 = vadd.f32 %v973_v37, %v891_v36 }
  0xd6   : > { %v370_v39 = vpop.f32.mrf.mxu0 }
  0xd7   : > { %v371_v40 = vadd.f32 %v891_v36, %v370_v39  ;;  %v450_v43 = vmax.f32 %v376_v38, 0.0 }
  0xd8   : > { %v976_v41 = vpop.f32.mrf.mxu0 }
  0xd9   : > { %v449_v42 = vmax.f32 %v371_v40, 0.0  ;;  %v386_v44 = vadd.f32 %v976_v41, %v891_v36 }
  0xda   : > { %v380_v45 = vpop.f32.mrf.mxu0 }
  0xdb   : > { %v381_v46 = vadd.f32 %v891_v36, %v380_v45  ;;  %1027 = vmatprep.mubr.f32.mxu0 %v449_v42  ;;  %v452_v50 = vmax.f32 %v386_v44, 0.0 }
  0xdc   : > { %v979_v47 = vpop.f32.mrf.mxu0  ;;  %1028 = vmatmul.mubr.f32.vlgmr.msra.gmra.mxu0 %v450_v43 }
  0xdd   : > { %v451_v48 = vmax.f32 %v381_v46, 0.0  ;;  %v396_v49 = vadd.f32 %v979_v47, %v891_v36 }
  0xde   : > { %v390_v51 = vpop.f32.mrf.mxu0 }
  0xdf   : > { %v391_v52 = vadd.f32 %v891_v36, %v390_v51  ;;  %1030 = vmatprep.mubr.f32.mxu0 %v451_v48  ;;  %v454_v53 = vmax.f32 %v396_v49, 0.0 }
  0xe0   : > { %v982_v54 = vpop.f32.mrf.mxu0  ;;  %1031 = vmatmul.mubr.f32.gmra.mxu0 %v452_v50 }
  0xe1   : > { %v453_v55 = vmax.f32 %v391_v52, 0.0  ;;  %v406_v56 = vadd.f32 %v982_v54, %v891_v36 }
  0xe2   : > { %v400_v57 = vpop.f32.mrf.mxu0 }
  0xe3   : > { %1033 = vmatprep.mubr.f32.mxu0 %v453_v55  ;;  %v401_v58 = vadd.f32 %v891_v36, %v400_v57  ;;  %v456_v59 = vmax.f32 %v406_v56, 0.0 }
  0xe4   : > { %v985_v60 = vpop.f32.mrf.mxu0  ;;  %1034 = vmatmul.mubr.f32.gmra.mxu0 %v454_v53 }
  0xe5   : > { %v416_v61 = vadd.f32 %v985_v60, %v891_v36  ;;  %v455_v62 = vmax.f32 %v401_v58, 0.0 }
  0xe6   : > { %v410_v63 = vpop.f32.mrf.mxu0 }
  0xe7   : > { %v411_v0 = vadd.f32 %v891_v36, %v410_v63  ;;  %1036 = vmatprep.mubr.f32.mxu1 %v455_v62  ;;  %v458_v1 = vmax.f32 %v416_v61, 0.0 }
  0xe8   : > { %v988_v2 = vpop.f32.mrf.mxu0  ;;  %1037 = vmatmul.mubr.f32.vlgmr.msra.gmra.mxu1 %v456_v59 }
  0xe9   : > { %v457_v3 = vmax.f32 %v411_v0, 0.0  ;;  %v426_v4 = vadd.f32 %v988_v2, %v891_v36 }
  0xea   : > { %v420_v5 = vpop.f32.mrf.mxu0 }
  0xeb   : > { %v421_v6 = vadd.f32 %v891_v36, %v420_v5  ;;  %1039 = vmatprep.mubr.f32.mxu1 %v457_v3  ;;  %v460_v7 = vmax.f32 %v426_v4, 0.0 }
  0xec   : > { %v991_v8 = vpop.f32.mrf.mxu0  ;;  %1040 = vmatmul.mubr.f32.gmra.mxu1 %v458_v1 }
  0xed   : > { %v459_v9 = vmax.f32 %v421_v6, 0.0  ;;  %v436_v10 = vadd.f32 %v991_v8, %v891_v36 }
  0xee   : > { %v430_v11 = vpop.f32.mrf.mxu0 }
  0xef   : > { %v431_v12 = vadd.f32 %v891_v36, %v430_v11  ;;  %1042 = vmatprep.mubr.f32.mxu1 %v459_v9  ;;  %v462_v13 = vmax.f32 %v436_v10, 0.0 }
  0xf0   : > { %v994_v14 = vpop.f32.mrf.mxu0  ;;  %1043 = vmatmul.mubr.f32.gmra.mxu1 %v460_v7 }
  0xf1   : > { %v461_v15 = vmax.f32 %v431_v12, 0.0  ;;  %v446_v16 = vadd.f32 %v994_v14, %v891_v36 }
  0xf2   : > { %v440_v17 = vpop.f32.mrf.mxu0 }
  0xf3   : > { %v441_v18 = vadd.f32 %v891_v36, %v440_v17  ;;  %1045 = vmatprep.mubr.f32.mxu1 %v461_v15  ;;  %v464_v19 = vmax.f32 %v446_v16, 0.0 }
  0xf4   : > { %1046 = vmatmul.mubr.f32.gmra.mxu1 %v462_v13 }
  0xf5   : > { %v463_v20 = vmax.f32 %v441_v18, 0.0 }
  0xf7   : > { %1048 = vmatprep.mubr.f32.mxu1 %v463_v20 }
  0xf8   : > { %1049 = vmatmul.mubr.f32.gmra.mxu1 %v464_v19 }
 0x19c   : > { %v1029_v22 = vpop.f32.mrf.mxu0 }
 0x19d   : > { %v1309_v23 = vadd.f32 %v1029_v22, %v908_v21 }
 0x19e   : > { %v554_v24 = vpop.f32.mrf.mxu0 }
 0x19f   : > { %v1311_v25 = vadd.f32 %v908_v21, %v554_v24  ;;  %v637_v26 = vsel %vm633_vm1, %v1309_v23, -inf }
 0x1a0   : > { %638 = vmax.xlane.f32.xlu0 %v637_v26  ;;  %v1032_v27 = vpop.f32.mrf.mxu0 }
 0x1a1   : > { %v1315_v28 = vadd.f32 %v1032_v27, %v908_v21  ;;  %v634_v32 = vsel %vm633_vm1, %v1311_v25, -inf }
 0x1a2   : > { %v564_v29 = vpop.f32.mrf.mxu0 }
 0x1a3   : > { %v1317_v30 = vadd.f32 %v908_v21, %v564_v29  ;;  %v643_v31 = vsel %vm633_vm1, %v1315_v28, -inf }
 0x1a4   : > { %644 = vmax.xlane.f32.xlu1 %v643_v31  ;;  %v1035_v33 = vpop.f32.mrf.mxu0  ;;  %635 = vmax.xlane.f32.xlu0 %v634_v32 }
 0x1a5   : > { %v1323_v35 = vadd.f32 %v1035_v33, %v908_v21  ;;  %v640_v37 = vsel %vm633_vm1, %v1317_v30, -inf }
 0x1a6   : > { %v574_v34 = vpop.f32.mrf.mxu0 }
 0x1a7   : > { %v1325_v36 = vadd.f32 %v908_v21, %v574_v34  ;;  %v649_v43 = vsel %vm633_vm1, %v1323_v35, -inf }
 0x1a8   : > { %v1038_v38 = vpop.f32.mrf.mxu1  ;;  %641 = vmax.xlane.f32.xlu1 %v640_v37 }
 0x1a9   : > { %v646_v39 = vsel %vm633_vm1, %v1325_v36, -inf  ;;  %v1331_v41 = vadd.f32 %v1038_v38, %v908_v21 }
 0x1aa   : > { %v584_v40 = vpop.f32.mrf.mxu1  ;;  %647 = vmax.xlane.f32.xlu0 %v646_v39 }
 0x1ab   : > { %v1333_v42 = vadd.f32 %v908_v21, %v584_v40  ;;  %v655_v49 = vsel %vm633_vm1, %v1331_v41, -inf }
 0x1ac   : > { %v1041_v44 = vpop.f32.mrf.mxu1  ;;  %650 = vmax.xlane.f32.xlu1 %v649_v43 }
 0x1ad   : > { %v652_v45 = vsel %vm633_vm1, %v1333_v42, -inf  ;;  %v1339_v47 = vadd.f32 %v1041_v44, %v908_v21 }
 0x1ae   : > { %v594_v46 = vpop.f32.mrf.mxu1  ;;  %653 = vmax.xlane.f32.xlu0 %v652_v45 }
 0x1af   : > { %v1341_v48 = vadd.f32 %v908_v21, %v594_v46  ;;  %v661_v55 = vsel %vm633_vm1, %v1339_v47, -inf }
 0x1b0   : > { %v1044_v50 = vpop.f32.mrf.mxu1  ;;  %656 = vmax.xlane.f32.xlu1 %v655_v49 }
 0x1b1   : > { %v658_v51 = vsel %vm633_vm1, %v1341_v48, -inf  ;;  %v1347_v53 = vadd.f32 %v1044_v50, %v908_v21 }
 0x1b2   : > { %v604_v52 = vpop.f32.mrf.mxu1  ;;  %659 = vmax.xlane.f32.xlu0 %v658_v51 }
 0x1b3   : > { %v1349_v54 = vadd.f32 %v908_v21, %v604_v52  ;;  %v667_v61 = vsel %vm633_vm1, %v1347_v53, -inf }
 0x1b4   : > { %v1047_v56 = vpop.f32.mrf.mxu1  ;;  %662 = vmax.xlane.f32.xlu1 %v661_v55 }
 0x1b5   : > { %v664_v57 = vsel %vm633_vm1, %v1349_v54, -inf  ;;  %v1355_v59 = vadd.f32 %v1047_v56, %v908_v21 }
 0x1b6   : > { %v614_v58 = vpop.f32.mrf.mxu1  ;;  %665 = vmax.xlane.f32.xlu0 %v664_v57 }
 0x1b7   : > { %v1357_v60 = vadd.f32 %v908_v21, %v614_v58  ;;  %v673_v3 = vsel %vm633_vm1, %v1355_v59, -inf }
 0x1b8   : > { %v1050_v62 = vpop.f32.mrf.mxu1  ;;  %668 = vmax.xlane.f32.xlu1 %v667_v61 }
 0x1b9   : > { %v670_v63 = vsel %vm633_vm1, %v1357_v60, -inf  ;;  %v1363_v1 = vadd.f32 %v1050_v62, %v908_v21 }
 0x1ba   : > { %v624_v0 = vpop.f32.mrf.mxu1  ;;  %671 = vmax.xlane.f32.xlu0 %v670_v63 }
 0x1bb   : > { %v1365_v2 = vadd.f32 %v908_v21, %v624_v0  ;;  %v679_v5 = vsel %vm633_vm1, %v1363_v1, -inf }
 0x1bc   : > { %674 = vmax.xlane.f32.xlu1 %v673_v3 }
 0x1bd   : > { %v676_v4 = vsel %vm633_vm1, %v1365_v2, -inf }
 0x1be   : > { %677 = vmax.xlane.f32.xlu0 %v676_v4 }
 0x1c0   : > { %680 = vmax.xlane.f32.xlu1 %v679_v5 }
 0x229   : > { %v639_v6 = vpop.xlane.xlu0 %638 }
 0x22a   : > { %v683_v7 = vsub.f32 %v1309_v23, %v639_v6 }
 0x22c   : > { %v700_v8 = vmul.f32 1.442695, %v683_v7 }
 0x22d   : > { %v645_v9 = vpop.xlane.xlu1 %644  ;;  %v636_v10 = vpop.xlane.xlu0 %635 }
 0x22e   : > { %1091 = vpow2.f32 %v700_v8  ;;  %v685_v11 = vsub.f32 %v1315_v28, %v645_v9  ;;  %v682_v12 = vsub.f32 %v1311_v25, %v636_v10 }
 0x230   : > { %v704_v13 = vmul.f32 1.442695, %v685_v11  ;;  %v698_v14 = vmul.f32 1.442695, %v682_v12 }
 0x231   : > { %v642_v15 = vpop.xlane.xlu1 %641 }
 0x232   : > { %1093 = vpow2.f32 %v704_v13  ;;  %v684_v16 = vsub.f32 %v1317_v30, %v642_v15 }
 0x233   : > { %1095 = vpow2.f32 %v698_v14  ;;  %v648_v17 = vpop.xlane.xlu0 %647 }
 0x234   : > { %v702_v18 = vmul.f32 1.442695, %v684_v16  ;;  %v686_v19 = vsub.f32 %v1325_v36, %v648_v17 }
 0x235   : > { %v651_v20 = vpop.xlane.xlu1 %650 }
 0x236   : > { %1097 = vpow2.f32 %v702_v18  ;;  %v706_v21 = vmul.f32 1.442695, %v686_v19  ;;  %v687_v22 = vsub.f32 %v1323_v35, %v651_v20 }
 0x237   : > { %v654_v23 = vpop.xlane.xlu0 %653 }
 0x238   : > { %v708_v24 = vmul.f32 1.442695, %v687_v22  ;;  %v688_v25 = vsub.f32 %v1333_v42, %v654_v23  ;;  %1099 = vpow2.f32 %v706_v21 }
 0x239   : > { %v657_v26 = vpop.xlane.xlu1 %656 }
 0x23a   : > { %1101 = vpow2.f32 %v708_v24  ;;  %v710_v27 = vmul.f32 1.442695, %v688_v25  ;;  %v689_v28 = vsub.f32 %v1331_v41, %v657_v26 }
 0x23b   : > { %v1381_v29 = vpop.eup %1091  ;;  %v660_v30 = vpop.xlane.xlu0 %659 }
 0x23c   : > { %v712_v31 = vmul.f32 1.442695, %v689_v28  ;;  %v690_v32 = vsub.f32 %v1341_v48, %v660_v30  ;;  %v733_v33 = vsel %vm633_vm1, %v1381_v29, 0.0  ;;  %1103 = vpow2.f32 %v710_v27 }
 0x23d   : > { %734 = vadd.xlane.f32.xlu1 %v733_v33  ;;  %v663_v34 = vpop.xlane.xlu1 %662 }
 0x23e   : > { %1105 = vpow2.f32 %v712_v31  ;;  %v714_v35 = vmul.f32 1.442695, %v690_v32  ;;  %v691_v36 = vsub.f32 %v1339_v47, %v663_v34 }
 0x23f   : > { %v1387_v37 = vpop.eup %1093  ;;  %v666_v38 = vpop.xlane.xlu0 %665 }
 0x240   : > { %v1389_v39 = vpop.eup %1095  ;;  %v716_v40 = vmul.f32 1.442695, %v691_v36  ;;  %v692_v41 = vsub.f32 %v1349_v54, %v666_v38  ;;  %v739_v42 = vsel %vm633_vm1, %v1387_v37, 0.0  ;;  %1107 = vpow2.f32 %v714_v35 }
 0x241   : > { %740 = vadd.xlane.f32.xlu1 %v739_v42  ;;  %v669_v43 = vpop.xlane.xlu1 %668  ;;  %v730_v44 = vsel %vm633_vm1, %v1389_v39, 0.0 }
 0x242   : > { %1109 = vpow2.f32 %v716_v40  ;;  %v718_v45 = vmul.f32 1.442695, %v692_v41  ;;  %v693_v46 = vsub.f32 %v1347_v53, %v669_v43  ;;  %731 = vadd.xlane.f32.xlu0 %v730_v44 }
 0x243   : > { %v1397_v47 = vpop.eup %1097  ;;  %v672_v48 = vpop.xlane.xlu0 %671 }
 0x244   : > { %v720_v49 = vmul.f32 1.442695, %v693_v46  ;;  %v694_v50 = vsub.f32 %v1357_v60, %v672_v48  ;;  %v736_v51 = vsel %vm633_vm1, %v1397_v47, 0.0  ;;  %1111 = vpow2.f32 %v718_v45 }
 0x245   : > { %v675_v52 = vpop.xlane.xlu1 %674  ;;  %v1402_v54 = vpop.eup %1099 }
 0x246   : > { %1113 = vpow2.f32 %v720_v49  ;;  %v722_v55 = vmul.f32 1.442695, %v694_v50  ;;  %v695_v56 = vsub.f32 %v1355_v59, %v675_v52  ;;  %737 = vadd.xlane.f32.xlu0 %v736_v51  ;;  %v742_v63 = vsel %vm633_vm1, %v1402_v54, 0.0 }
 0x247   : > { %v1405_v53 = vpop.eup %1101  ;;  %v678_v57 = vpop.xlane.xlu0 %677 }
 0x248   : > { %v724_v58 = vmul.f32 1.442695, %v695_v56  ;;  %v696_v61 = vsub.f32 %v1365_v2, %v678_v57  ;;  %v745_v60 = vsel %vm633_vm1, %v1405_v53, 0.0  ;;  %1115 = vpow2.f32 %v722_v55 }
 0x249   : > { %746 = vadd.xlane.f32.xlu1 %v745_v60  ;;  %v681_v62 = vpop.xlane.xlu1 %680  ;;  %v1412_v0 = vpop.eup %1103 }
 0x24a   : > { %1117 = vpow2.f32 %v724_v58  ;;  %v726_v59 = vmul.f32 1.442695, %v696_v61  ;;  %v697_v3 = vsub.f32 %v1363_v1, %v681_v62  ;;  %743 = vadd.xlane.f32.xlu0 %v742_v63  ;;  %v748_v6 = vsel %vm633_vm1, %v1412_v0, 0.0 }
 0x24b   : > { %v1415_v4 = vpop.eup %1105 }
 0x24c   : > { %v728_v5 = vmul.f32 1.442695, %v697_v3  ;;  %v751_v2 = vsel %vm633_vm1, %v1415_v4, 0.0  ;;  %1119 = vpow2.f32 %v726_v59 }
 0x24d   : > { %752 = vadd.xlane.f32.xlu1 %v751_v2  ;;  %v1421_v7 = vpop.eup %1107 }
 0x24e   : > { %1121 = vpow2.f32 %v728_v5  ;;  %749 = vadd.xlane.f32.xlu0 %v748_v6  ;;  %v754_v9 = vsel %vm633_vm1, %v1421_v7, 0.0 }
 0x24f   : > { %v1423_v8 = vpop.eup %1109 }
 0x250   : > { %v757_v1 = vsel %vm633_vm1, %v1423_v8, 0.0 }
 0x251   : > { %758 = vadd.xlane.f32.xlu1 %v757_v1  ;;  %v1429_v10 = vpop.eup %1111 }
 0x252   : > { %755 = vadd.xlane.f32.xlu0 %v754_v9  ;;  %v760_v13 = vsel %vm633_vm1, %v1429_v10, 0.0 }
 0x253   : > { %v1431_v11 = vpop.eup %1113 }
 0x254   : > { %v763_v12 = vsel %vm633_vm1, %v1431_v11, 0.0 }
 0x255   : > { %764 = vadd.xlane.f32.xlu1 %v763_v12  ;;  %v1437_v14 = vpop.eup %1115 }
 0x256   : > { %761 = vadd.xlane.f32.xlu0 %v760_v13  ;;  %v766_v17 = vsel %vm633_vm1, %v1437_v14, 0.0 }
 0x257   : > { %v1439_v15 = vpop.eup %1117 }
 0x258   : > { %v769_v16 = vsel %vm633_vm1, %v1439_v15, 0.0 }
 0x259   : > { %770 = vadd.xlane.f32.xlu1 %v769_v16  ;;  %v1445_v18 = vpop.eup %1119 }
 0x25a   : > { %767 = vadd.xlane.f32.xlu0 %v766_v17  ;;  %v772_v21 = vsel %vm633_vm1, %v1445_v18, 0.0 }
 0x25b   : > { %v1447_v19 = vpop.eup %1121 }
 0x25c   : > { %v775_v20 = vsel %vm633_vm1, %v1447_v19, 0.0 }
 0x25d   : > { %776 = vadd.xlane.f32.xlu1 %v775_v20 }
 0x25e   : > { %773 = vadd.xlane.f32.xlu0 %v772_v21 }
 0x2c6   : > { %v735_v22 = vpop.xlane.xlu1 %734 }
 0x2c7   : > { %1123 = vrcp.f32 %v735_v22 }
 0x2ca   : > { %v741_v23 = vpop.xlane.xlu1 %740 }
 0x2cb   : > { %1125 = vrcp.f32 %v741_v23  ;;  %v732_v24 = vpop.xlane.xlu0 %731 }
 0x2cc   : > { %1127 = vrcp.f32 %v732_v24 }
 0x2cf   : > { %v738_v25 = vpop.xlane.xlu0 %737 }
 0x2d0   : > { %1129 = vrcp.f32 %v738_v25 }
 0x2d2   : > { %v747_v26 = vpop.xlane.xlu1 %746 }
 0x2d3   : > { %1131 = vrcp.f32 %v747_v26  ;;  %v744_v27 = vpop.xlane.xlu0 %743 }
 0x2d4   : > { %v1124_v28 = vpop.eup %1123  ;;  %1133 = vrcp.f32 %v744_v27 }
 0x2d5   : > { %v781_v30 = vmul.f32 %v1124_v28, %v1381_v29 }
 0x2d6   : > { %v753_v31 = vpop.xlane.xlu1 %752 }
 0x2d7   : > { %811 = vst.msk [vmem:[%s1458_s26 + $0x8] sm:$0xff] %vm633_vm1, %v781_v30  ;;  %1135 = vrcp.f32 %v753_v31  ;;  %v750_v32 = vpop.xlane.xlu0 %749 }
 0x2d8   : > { %v1126_v33 = vpop.eup %1125  ;;  %1137 = vrcp.f32 %v750_v32 }
 0x2d9   : > { %v1128_v34 = vpop.eup %1127  ;;  %v785_v35 = vmul.f32 %v1126_v33, %v1387_v37 }
 0x2da   : > { %v779_v36 = vmul.f32 %v1128_v34, %v1389_v39  ;;  %v759_v38 = vpop.xlane.xlu1 %758 }
 0x2db   : > { %813 = vst.msk [vmem:[%s1458_s26 + $0x18] sm:$0xff] %vm633_vm1, %v785_v35  ;;  %1139 = vrcp.f32 %v759_v38  ;;  %v756_v40 = vpop.xlane.xlu0 %755 }
 0x2dc   : > { %810 = vst.msk [vmem:[%s1458_s26] sm:$0xff] %vm633_vm1, %v779_v36  ;;  %1141 = vrcp.f32 %v756_v40 }
 0x2dd   : > { %v1130_v29 = vpop.eup %1129 }
 0x2de   : > { %v783_v41 = vmul.f32 %v1130_v29, %v1397_v47  ;;  %v765_v42 = vpop.xlane.xlu1 %764 }
 0x2df   : > { %1143 = vrcp.f32 %v765_v42  ;;  %v762_v43 = vpop.xlane.xlu0 %761 }
 0x2e0   : > { %v1132_v44 = vpop.eup %1131  ;;  %812 = vst.msk [vmem:[%s1458_s26 + $0x10] sm:$0xff] %vm633_vm1, %v783_v41  ;;  %1145 = vrcp.f32 %v762_v43 }
 0x2e1   : > { %v1134_v37 = vpop.eup %1133  ;;  %v789_v39 = vmul.f32 %v1132_v44, %v1405_v53 }
 0x2e2   : > { %v787_v45 = vmul.f32 %v1134_v37, %v1402_v54  ;;  %v771_v46 = vpop.xlane.xlu1 %770 }
 0x2e3   : > { %815 = vst.msk [vmem:[%s1458_s26 + $0x28] sm:$0xff] %vm633_vm1, %v789_v39  ;;  %1147 = vrcp.f32 %v771_v46  ;;  %v768_v48 = vpop.xlane.xlu0 %767 }
 0x2e4   : > { %v1136_v47 = vpop.eup %1135  ;;  %814 = vst.msk [vmem:[%s1458_s26 + $0x20] sm:$0xff] %vm633_vm1, %v787_v45  ;;  %1149 = vrcp.f32 %v768_v48 }
 0x2e5   : > { %v1138_v49 = vpop.eup %1137  ;;  %v793_v50 = vmul.f32 %v1136_v47, %v1415_v4 }
 0x2e6   : > { %v791_v51 = vmul.f32 %v1138_v49, %v1412_v0  ;;  %v777_v52 = vpop.xlane.xlu1 %776 }
 0x2e7   : > { %817 = vst.msk [vmem:[%s1458_s26 + $0x38] sm:$0xff] %vm633_vm1, %v793_v50  ;;  %1151 = vrcp.f32 %v777_v52  ;;  %v774_v54 = vpop.xlane.xlu0 %773 }
 0x2e8   : > { %v1140_v55 = vpop.eup %1139  ;;  %816 = vst.msk [vmem:[%s1458_s26 + $0x30] sm:$0xff] %vm633_vm1, %v791_v51  ;;  %1153 = vrcp.f32 %v774_v54 }
 0x2e9   : > { %v1142_v56 = vpop.eup %1141  ;;  %v797_v53 = vmul.f32 %v1140_v55, %v1423_v8 }
 0x2ea   : > { %v795_v57 = vmul.f32 %v1142_v56, %v1421_v7 }
 0x2eb   : > { %819 = vst.msk [vmem:[%s1458_s26 + $0x48] sm:$0xff] %vm633_vm1, %v797_v53 }
 0x2ec   : > { %v1144_v58 = vpop.eup %1143  ;;  %818 = vst.msk [vmem:[%s1458_s26 + $0x40] sm:$0xff] %vm633_vm1, %v795_v57 }
 0x2ed   : > { %v1146_v61 = vpop.eup %1145  ;;  %v801_v60 = vmul.f32 %v1144_v58, %v1431_v11 }
 0x2ee   : > { %v799_v62 = vmul.f32 %v1146_v61, %v1429_v10 }
 0x2ef   : > { %821 = vst.msk [vmem:[%s1458_s26 + $0x58] sm:$0xff] %vm633_vm1, %v801_v60 }
 0x2f0   : > { %v1148_v63 = vpop.eup %1147  ;;  %820 = vst.msk [vmem:[%s1458_s26 + $0x50] sm:$0xff] %vm633_vm1, %v799_v62 }
 0x2f1   : > { %v1150_v0 = vpop.eup %1149  ;;  %v805_v59 = vmul.f32 %v1148_v63, %v1439_v15 }
 0x2f2   : > { %v803_v3 = vmul.f32 %v1150_v0, %v1437_v14 }
 0x2f3   : > { %823 = vst.msk [vmem:[%s1458_s26 + $0x68] sm:$0xff] %vm633_vm1, %v805_v59 }
 0x2f4   : > { %v1152_v4 = vpop.eup %1151  ;;  %822 = vst.msk [vmem:[%s1458_s26 + $0x60] sm:$0xff] %vm633_vm1, %v803_v3 }
 0x2f5   : > { %v1154_v5 = vpop.eup %1153  ;;  %v809_v2 = vmul.f32 %v1152_v4, %v1447_v19 }
 0x2f6   : > { %v807_v6 = vmul.f32 %v1154_v5, %v1445_v18 }
 0x2f7   : > { %825 = vst.msk [vmem:[%s1458_s26 + $0x78] sm:$0xff] %vm633_vm1, %v809_v2 }
 0x2f8   : > { %824 = vst.msk [vmem:[%s1458_s26 + $0x70] sm:$0xff] %vm633_vm1, %v807_v6 }
 0x2f9 PF: > { %s15_s18 = sadd.s32 1, %s1161_s18  }
 0x2fa   : > { %p12_p4 = scmp.ge.s32.totalorder %s15_s18, 4  }
 0x2fc   :  { %14 = sbr.rel (!%p12_p4) target bundleno = 1 (0x1), region = 70 }

</bundles_post_ra>
